<compile_context>
chip_gen: v6e
topology: v6e:2x2x1
jax: 0.10.0
libtpu: 0.0.40
codegen_flags: <defaults>
</compile_context>

<pallas_src>
import functools

import jax
import jax.numpy as jnp
from jax import lax
from jax.experimental import pallas as pl
from jax.experimental.pallas import tpu as pltpu


def _loss_kernel(cls_ref, gtc_ref, reg_ref, gtr_ref, l1_ref, l2_ref, *, n_total):
    i = pl.program_id(0)

    logp = cls_ref[...].astype(jnp.float32)        # (TN, C)
    gtc = gtc_ref[...].astype(jnp.float32)         # (TN, C)
    tn, c = logp.shape

    # Valid-row mask: handles the partially out-of-bounds final cls tile when TILE_N does
    # not divide N (OOB rows are read but every use sits behind a select).
    row = lax.broadcasted_iota(jnp.int32, (tn, 1), 0) + i * tn
    valid = row < n_total                          # (TN, 1)

    # ---- L1 partial: sum over valid rows of logp[row, argmax(gt_cls0[row])] ----
    col = lax.broadcasted_iota(jnp.int32, (tn, c), 1)
    row_max = jnp.max(gtc, axis=1, keepdims=True)
    # first column attaining the row max (jnp.argmax / torch.max tie-breaking)
    idx = jnp.min(jnp.where(gtc == row_max, col, c), axis=1, keepdims=True)   # (TN, 1)
    sel = jnp.sum(jnp.where(col == idx, logp, 0.0), axis=1, keepdims=True)    # (TN, 1)
    sel = jnp.where(valid, sel, 0.0)
    l1_part = jnp.sum(sel, keepdims=True)                                     # (1, 1)

    # ---- L2 partial: total smooth-L1 sum over this lane-dense slab tile ----
    # Slab was zero-padded in the wrapper, so no mask is needed (pad contributes 0).
    d_abs = jnp.abs(reg_ref[...].astype(jnp.float32) - gtr_ref[...].astype(jnp.float32))
    sl = jnp.where(d_abs < 1.0, 0.5 * d_abs * d_abs, d_abs - 0.5)
    l2_part = jnp.sum(sl, keepdims=True)                                      # (1, 1)

    # ---- Emit per-tile partials into element [0,0] of a lane-dense (8,128) block ----
    sub = lax.broadcasted_iota(jnp.int32, l1_ref.shape, 0)
    lane = lax.broadcasted_iota(jnp.int32, l1_ref.shape, 1)
    onehot = (sub == 0) & (lane == 0)
    l1_ref[...] = jnp.where(onehot, l1_part, 0.0).astype(l1_ref.dtype)
    l2_ref[...] = jnp.where(onehot, l2_part, 0.0).astype(l2_ref.dtype)


def _vmem_budget_bytes():
    """Generation-aware scoped-VMEM budget with headroom below physical capacity."""
    try:
        cap = int(pltpu.get_tpu_info().vmem_capacity_bytes)
    except Exception:
        cap = 64 * 1024 * 1024                      # conservative: assume v7x-sized VMEM
    if cap >= 128 * 1024 * 1024:                    # v5e / v6e: 128 MiB physical
        return 96 * 1024 * 1024
    return max(32 * 1024 * 1024, int(cap * 0.65))   # v7x: 64 MiB physical -> ~41 MiB


def _pick_tile_n(n, c, d, vmem_budget, max_tile_n):
    """Batch-row tile: multiple of 8, as large as the (double-buffered) VMEM budget allows."""
    if n <= 8:
        return n                                    # full-dim block (always legal)
    lanes_c = ((c + 127) // 128) * 128              # physical lane padding of the cls blocks
    # 2 pipeline buffers x (cls pair padded to 128 lanes + lane-dense reg pair), f32 bound.
    bytes_per_row = 2 * (2 * lanes_c + 2 * d) * 4
    usable = vmem_budget // 2                       # headroom for outputs/compiler scratch
    cap = max(8, (usable // max(bytes_per_row, 1)) // 8 * 8)
    return max(8, min(max_tile_n, cap, (n // 8) * 8))


def loss_function(cls_logp, gt_cls0, reg_out, gt_reg0, *, max_tile_n=8192):
    n, c = cls_logp.shape
    n2, d = reg_out.shape
    assert n2 == n, "batch dims of cls and reg inputs must match"
    assert gt_cls0.shape == (n, c) and gt_reg0.shape == (n, d)

    vmem_budget = _vmem_budget_bytes()
    tile_n = _pick_tile_n(n, c, d, vmem_budget, max_tile_n)
    num_tiles = pl.cdiv(n, tile_n)

    # ---- Lane-dense repack of the regression tensors (keeps native dtype) ----
    total_reg = n * d
    reg_rows_total = pl.cdiv(total_reg, 128)
    if num_tiles == 1:
        reg_rows = max(1, reg_rows_total)           # full-array block is always legal
    else:
        reg_rows = ((pl.cdiv(reg_rows_total, num_tiles) + 7) // 8) * 8
    slab_rows = reg_rows * num_tiles
    pad_elems = slab_rows * 128 - total_reg
    reg_slab = jnp.pad(jnp.reshape(reg_out, (-1,)), (0, pad_elems)).reshape(slab_rows, 128)
    gtr_slab = jnp.pad(jnp.reshape(gt_reg0, (-1,)), (0, pad_elems)).reshape(slab_rows, 128)

    kernel = functools.partial(_loss_kernel, n_total=n)

    bytes_in = ((cls_logp.size + gt_cls0.size) * cls_logp.dtype.itemsize
                + (reg_slab.size + gtr_slab.size) * reg_slab.dtype.itemsize)
    bytes_out = 2 * num_tiles * 8 * 128 * 4
    cost = pl.CostEstimate(
        flops=int(n * (6 * c + 5 * d)),
        transcendentals=0,
        bytes_accessed=int(bytes_in + bytes_out),
    )

    l1_parts, l2_parts = pl.pallas_call(
        kernel,
        out_shape=(
            jax.ShapeDtypeStruct((num_tiles * 8, 128), jnp.float32),
            jax.ShapeDtypeStruct((num_tiles * 8, 128), jnp.float32),
        ),
        grid=(num_tiles,),
        in_specs=[
            pl.BlockSpec((tile_n, c), lambda i: (i, 0)),
            pl.BlockSpec((tile_n, c), lambda i: (i, 0)),
            pl.BlockSpec((reg_rows, 128), lambda i: (i, 0)),
            pl.BlockSpec((reg_rows, 128), lambda i: (i, 0)),
        ],
        out_specs=(
            pl.BlockSpec((8, 128), lambda i: (i, 0)),
            pl.BlockSpec((8, 128), lambda i: (i, 0)),
        ),
        compiler_params=pltpu.CompilerParams(
            # Per-tile disjoint partial outputs -> grid axis is fully parallel
            # (sharded across both v7x TensorCores; neutral on v5e/v6e).
            dimension_semantics=("parallel",),
            vmem_limit_bytes=int(vmem_budget),
        ),
        cost_estimate=cost,
    )(cls_logp, gt_cls0, reg_slab, gtr_slab)

    # Finalize in the wrapper: batch mean + NLL negation (tree-sum of per-tile partials).
    inv_n = jnp.float32(1.0 / n)
    L1 = -jnp.sum(l1_parts) * inv_n
    L2 = jnp.sum(l2_parts) * inv_n
    return L1 + L2, L1, L2


def _reference(cls_logp, gt_cls0, reg_out, gt_reg0):
    idx = jnp.argmax(gt_cls0, axis=1)
    L1 = -jnp.mean(cls_logp[jnp.arange(cls_logp.shape[0]), idx])
    dist = jnp.abs(reg_out - gt_reg0)
    sl = jnp.where(dist < 1.0, 0.5 * dist * dist, dist - 0.5)
    L2 = jnp.mean(jnp.sum(sl, axis=1))
    return L1 + L2, L1, L2


def _make_inputs(key, n, c, d):
    k1, k2, k3, k4 = jax.random.split(key, 4)
    cls_logits = jax.random.normal(k1, (n, c), dtype=jnp.float32)
    cls_logp = jax.nn.log_softmax(cls_logits, axis=1)
    gt_cls0 = jax.random.normal(k2, (n, c), dtype=jnp.float32)
    reg_out = jax.random.normal(k3, (n, d), dtype=jnp.float32) * 2.0
    gt_reg0 = jax.random.normal(k4, (n, d), dtype=jnp.float32) * 2.0
    return cls_logp, gt_cls0, reg_out, gt_reg0


if __name__ == "__main__":
    key = jax.random.PRNGKey(0)
    k_a, k_b = jax.random.split(key)

    # Case 1: batch not a multiple of the row tile -> grid > 1, remainder-row masking,
    #         zero-padded lane-dense reg slab.
    inputs_a = _make_inputs(k_a, 20, 16, 16)
    total, L1, L2 = loss_function(*inputs_a)
    jax.block_until_ready((total, L1, L2))
    r_total, r_L1, r_L2 = _reference(*inputs_a)
    assert jnp.allclose(total, r_total, atol=1e-5), (total, r_total)
    assert jnp.allclose(L1, r_L1, atol=1e-5), (L1, r_L1)
    assert jnp.allclose(L2, r_L2, atol=1e-5), (L2, r_L2)

    # Case 2: odd feature widths, single tile (full-array reg block), non-trivial padding.
    inputs_b = _make_inputs(k_b, 200, 10, 24)
    total, L1, L2 = loss_function(*inputs_b)
    jax.block_until_ready((total, L1, L2))
    r_total, r_L1, r_L2 = _reference(*inputs_b)
    assert jnp.allclose(total, r_total, atol=1e-5), (total, r_total)
    assert jnp.allclose(L1, r_L1, atol=1e-5), (L1, r_L1)
    assert jnp.allclose(L2, r_L2, atol=1e-5), (L2, r_L2)

    print("KERNEL_OK")
</pallas_src>

<mosaic_0001>
module attributes {stable_mosaic.version = 11 : i64} {
  func.func @_loss_kernel(%arg0: i32, %arg1: memref<16x16xf32, #tpu.memory_space<vmem>>, %arg2: memref<16x16xf32, #tpu.memory_space<vmem>>, %arg3: memref<8x128xf32, #tpu.memory_space<vmem>>, %arg4: memref<8x128xf32, #tpu.memory_space<vmem>>, %arg5: memref<8x128xf32, #tpu.memory_space<vmem>>, %arg6: memref<8x128xf32, #tpu.memory_space<vmem>>) attributes {dimension_semantics = [#tpu.dimension_semantics<parallel>], iteration_bounds = array<i64: 2>, scalar_prefetch = 0 : i64, scratch_operands = 0 : i64, tpu.core_type = #tpu.core_type<tc>, window_params = [{transform_indices = @transform_0, window_bounds = array<i64: 16, 16>}, {transform_indices = @transform_1, window_bounds = array<i64: 16, 16>}, {transform_indices = @transform_2, window_bounds = array<i64: 8, 128>}, {transform_indices = @transform_3, window_bounds = array<i64: 8, 128>}, {transform_indices = @transform_4, window_bounds = array<i64: 8, 128>}, {transform_indices = @transform_5, window_bounds = array<i64: 8, 128>}]} {
    %c0 = arith.constant 0 : index
    %c0_0 = arith.constant 0 : index
    %0 = vector.load %arg1[%c0, %c0_0] : memref<16x16xf32, #tpu.memory_space<vmem>>, vector<16x16xf32>
    %c0_1 = arith.constant 0 : index
    %c0_2 = arith.constant 0 : index
    %1 = vector.load %arg2[%c0_1, %c0_2] : memref<16x16xf32, #tpu.memory_space<vmem>>, vector<16x16xf32>
    %2 = tpu.iota {dimensions = array<i32: 0>} : vector<16x1xi32>
    %c16_i32 = arith.constant 16 : i32
    %3 = arith.muli %arg0, %c16_i32 : i32
    %4 = vector.broadcast %3 : i32 to vector<16x1xi32>
    %5 = arith.addi %2, %4 : vector<16x1xi32>
    %c20_i32 = arith.constant 20 : i32
    %6 = vector.broadcast %c20_i32 : i32 to vector<16x1xi32>
    %7 = arith.cmpi slt, %5, %6 : vector<16x1xi32>
    %8 = tpu.iota {dimensions = array<i32: 1>} : vector<16x16xi32>
    %cst = arith.constant dense<0xFF800000> : vector<16xf32>
    %9 = vector.multi_reduction <maximumf>, %1, %cst [1] : vector<16x16xf32> to vector<16xf32>
    %10 = vector.shape_cast %9 : vector<16xf32> to vector<16x1xf32>
    %11 = vector.broadcast %10 : vector<16x1xf32> to vector<16x16xf32>
    %12 = arith.cmpf oeq, %1, %11 : vector<16x16xf32>
    %c16_i32_3 = arith.constant 16 : i32
    %13 = vector.broadcast %c16_i32_3 : i32 to vector<16x16xi32>
    %14 = arith.select %12, %8, %13 : vector<16x16xi1>, vector<16x16xi32>
    %cst_4 = arith.constant dense<2147483647> : vector<16xi32>
    %15 = vector.multi_reduction <minsi>, %14, %cst_4 [1] : vector<16x16xi32> to vector<16xi32>
    %16 = vector.shape_cast %15 : vector<16xi32> to vector<16x1xi32>
    %17 = vector.broadcast %16 : vector<16x1xi32> to vector<16x16xi32>
    %18 = arith.cmpi eq, %8, %17 : vector<16x16xi32>
    %cst_5 = arith.constant 0.000000e+00 : f32
    %19 = vector.broadcast %cst_5 : f32 to vector<16x16xf32>
    %20 = arith.select %18, %0, %19 : vector<16x16xi1>, vector<16x16xf32>
    %cst_6 = arith.constant dense<0.000000e+00> : vector<16xf32>
    %21 = vector.multi_reduction <add>, %20, %cst_6 [1] : vector<16x16xf32> to vector<16xf32>
    %22 = vector.shape_cast %21 : vector<16xf32> to vector<16x1xf32>
    %cst_7 = arith.constant 0.000000e+00 : f32
    %23 = vector.broadcast %cst_7 : f32 to vector<16x1xf32>
    %24 = arith.select %7, %22, %23 : vector<16x1xi1>, vector<16x1xf32>
    %25 = vector.shape_cast %24 : vector<16x1xf32> to vector<1x16x1xf32>
    %cst_8 = arith.constant dense<0.000000e+00> : vector<1xf32>
    %26 = vector.multi_reduction <add>, %25, %cst_8 [1, 2] : vector<1x16x1xf32> to vector<1xf32>
    %27 = vector.shape_cast %26 : vector<1xf32> to vector<1x1x1xf32>
    %28 = vector.extract %27[0, 0, 0] : f32 from vector<1x1x1xf32>
    %29 = vector.broadcast %28 : f32 to vector<1x1xf32>
    %c0_9 = arith.constant 0 : index
    %c0_10 = arith.constant 0 : index
    %30 = vector.load %arg3[%c0_9, %c0_10] : memref<8x128xf32, #tpu.memory_space<vmem>>, vector<8x128xf32>
    %c0_11 = arith.constant 0 : index
    %c0_12 = arith.constant 0 : index
    %31 = vector.load %arg4[%c0_11, %c0_12] : memref<8x128xf32, #tpu.memory_space<vmem>>, vector<8x128xf32>
    %32 = arith.subf %30, %31 : vector<8x128xf32>
    %33 = math.absf %32 : vector<8x128xf32>
    %cst_13 = arith.constant 1.000000e+00 : f32
    %34 = vector.broadcast %cst_13 : f32 to vector<8x128xf32>
    %35 = arith.cmpf olt, %33, %34 : vector<8x128xf32>
    %cst_14 = arith.constant 5.000000e-01 : f32
    %36 = vector.broadcast %cst_14 : f32 to vector<8x128xf32>
    %37 = arith.mulf %36, %33 : vector<8x128xf32>
    %38 = arith.mulf %37, %33 : vector<8x128xf32>
    %cst_15 = arith.constant 5.000000e-01 : f32
    %39 = vector.broadcast %cst_15 : f32 to vector<8x128xf32>
    %40 = arith.subf %33, %39 : vector<8x128xf32>
    %41 = arith.select %35, %38, %40 : vector<8x128xi1>, vector<8x128xf32>
    %42 = vector.shape_cast %41 : vector<8x128xf32> to vector<1x8x128xf32>
    %cst_16 = arith.constant dense<0.000000e+00> : vector<1xf32>
    %43 = vector.multi_reduction <add>, %42, %cst_16 [1, 2] : vector<1x8x128xf32> to vector<1xf32>
    %44 = vector.shape_cast %43 : vector<1xf32> to vector<1x1x1xf32>
    %45 = vector.extract %44[0, 0, 0] : f32 from vector<1x1x1xf32>
    %46 = vector.broadcast %45 : f32 to vector<1x1xf32>
    %47 = tpu.iota {dimensions = array<i32: 0>} : vector<8x128xi32>
    %48 = tpu.iota {dimensions = array<i32: 1>} : vector<8x128xi32>
    %c0_i32 = arith.constant 0 : i32
    %49 = vector.broadcast %c0_i32 : i32 to vector<8x128xi32>
    %50 = arith.cmpi eq, %47, %49 : vector<8x128xi32>
    %c0_i32_17 = arith.constant 0 : i32
    %51 = vector.broadcast %c0_i32_17 : i32 to vector<8x128xi32>
    %52 = arith.cmpi eq, %48, %51 : vector<8x128xi32>
    %53 = arith.andi %50, %52 : vector<8x128xi1>
    %cst_18 = arith.constant 0.000000e+00 : f32
    %54 = vector.shape_cast %29 : vector<1x1xf32> to vector<1x1xf32>
    %55 = vector.broadcast %54 : vector<1x1xf32> to vector<8x128xf32>
    %56 = vector.broadcast %cst_18 : f32 to vector<8x128xf32>
    %57 = arith.select %53, %55, %56 : vector<8x128xi1>, vector<8x128xf32>
    %c0_19 = arith.constant 0 : index
    %c0_20 = arith.constant 0 : index
    %58 = vector.load %arg5[%c0_19, %c0_20] : memref<8x128xf32, #tpu.memory_space<vmem>>, vector<8x128xf32>
    tpu.vector_store %arg5[%c0_19, %c0_20], %57 {strides = array<i32>} : memref<8x128xf32, #tpu.memory_space<vmem>>, vector<8x128xf32>,
    %cst_21 = arith.constant 0.000000e+00 : f32
    %59 = vector.shape_cast %46 : vector<1x1xf32> to vector<1x1xf32>
    %60 = vector.broadcast %59 : vector<1x1xf32> to vector<8x128xf32>
    %61 = vector.broadcast %cst_21 : f32 to vector<8x128xf32>
    %62 = arith.select %53, %60, %61 : vector<8x128xi1>, vector<8x128xf32>
    %c0_22 = arith.constant 0 : index
    %c0_23 = arith.constant 0 : index
    %63 = vector.load %arg6[%c0_22, %c0_23] : memref<8x128xf32, #tpu.memory_space<vmem>>, vector<8x128xf32>
    tpu.vector_store %arg6[%c0_22, %c0_23], %62 {strides = array<i32>} : memref<8x128xf32, #tpu.memory_space<vmem>>, vector<8x128xf32>,
    return
  }
  func.func @transform_0(%arg0: i32) -> (i32, i32) {
    %c0_i32 = arith.constant 0 : i32
    %c0_i32_0 = arith.constant 0 : i32
    return %arg0, %c0_i32 : i32, i32
  }
  func.func @transform_1(%arg0: i32) -> (i32, i32) {
    %c0_i32 = arith.constant 0 : i32
    %c0_i32_0 = arith.constant 0 : i32
    return %arg0, %c0_i32 : i32, i32
  }
  func.func @transform_2(%arg0: i32) -> (i32, i32) {
    %c0_i32 = arith.constant 0 : i32
    %c0_i32_0 = arith.constant 0 : i32
    return %arg0, %c0_i32 : i32, i32
  }
  func.func @transform_3(%arg0: i32) -> (i32, i32) {
    %c0_i32 = arith.constant 0 : i32
    %c0_i32_0 = arith.constant 0 : i32
    return %arg0, %c0_i32 : i32, i32
  }
  func.func @transform_4(%arg0: i32) -> (i32, i32) {
    %c0_i32 = arith.constant 0 : i32
    %c0_i32_0 = arith.constant 0 : i32
    return %arg0, %c0_i32 : i32, i32
  }
  func.func @transform_5(%arg0: i32) -> (i32, i32) {
    %c0_i32 = arith.constant 0 : i32
    %c0_i32_0 = arith.constant 0 : i32
    return %arg0, %c0_i32 : i32, i32
  }
}

</mosaic_0001>

<bundles_post_ra>
// kernel: tpu_custom_call.1
= control target key start
LH: loop header
LB: loop body
LE: loop exit
PB: predicated region body
PF: predicated region fallthrough
CT: control target
= control target key end

     0   :  { %11 = vsyncpa [#allocation3], 0  ;;  %s955_s0 = inlined_call_operand.vmem [shape: f32[20,16], index: 0, kind: input, shape index: {}]   ;;  %s956_s1 = inlined_call_operand.vmem [shape: f32[20,16], index: 1, kind: input, shape index: {}]   ;;  %s957_s2 = inlined_call_operand.vmem [shape: f32[16,128], index: 2, kind: input, shape index: {}]   ;;  %s958_s3 = inlined_call_operand.vmem [shape: f32[16,128], index: 3, kind: input, shape index: {}]   ;;  %s959_s4 = inlined_call_operand.hbm [shape: f32[16,128], index: 4, kind: output, shape index: {0}]   ;;  %s960_s5 = inlined_call_operand.hbm [shape: f32[16,128], index: 5, kind: output, shape index: {1}]  }
   0x1   :  { %13 = vsyncpa [#allocation3 + $0x1], 0 }
   0x2   :  { %14 = vsyncpa [#allocation5], 0 }
   0x3   :  { %16 = vsyncpa [#allocation5 + $0x1], 0  ;;  %s791_s18 = smov 0   ;;  %s793_s19 = smov 0  }
   0x4   :  { %s795_s20 = smov 0   ;;  %s797_s21 = smov 0  }
   0x5 LB: > { %s812_s22 = sadd.s32 4294967295, %s757_s21   ;;  %s599_s23 = sadd.s32 4294967294, %s757_s21   ;;  %s757_s21 = sphi %s797_s21, %s966_s21   ;;  %s753_s20 = sphi %s795_s20, %s965_s20   ;;  %s749_s19 = sphi %s793_s19, %s964_s19   ;;  %s745_s18 = sphi %s791_s18, %s963_s18  }
   0x6   : > { %s816_s24 = sadd.s32 1, %s757_s21   ;;  %s133_s25 = sadd.s32 1, %s753_s20 }
   0x7   : > { %s130_s26 = ssub.s32 %s757_s21, %s816_s24  ;;  %p143_p0 = scmp.ne.s32.totalorder %s753_s20, %s749_s19 }
   0x8   : > { %p131_p1 = scmp.eq.s32.totalorder %s130_s26, 0  ;;  %p144_p2 = scmp.eq.s32.totalorder %s812_s22, 1 }
   0x9   : > { %p149_p3 = scmp.ne.s32.totalorder %s749_s19, %s745_s18  ;;  %p150_p4 = scmp.eq.s32.totalorder %s599_s23, 1 }
   0xa   : > { %s827_s27 = scalar_select %p131_p1, %s753_s20, %s133_s25  }
   0xb   : > { %p829_p5 = por %p144_p2, %p143_p0  ;;  %p833_p6 = por %p150_p4, %p149_p3 }
   0xc   : > { %p602_p7 = scmp.ge.s32.totalorder %s757_s21, 1  ;;  %p242_p8 = scmp.lt.s32.totalorder %s757_s21, 3 }
   0xe   : > { %p243_p9 = pnand %p602_p7, %p242_p8 }
   0xf   : > { %s605_s30 = sshll.u32 (!%p243_p9), %s812_s22, 1  ;;  %p324_p11 = scmp.lt.s32.totalorder (!%p243_p9), %s812_s22, 1 }
  0x10   : > { %246 = sbr.rel (%p243_p9) target bundleno = 840 (0x348), region = 36  ;;  %p301_p10 = scmp.lt.s32.totalorder (!%p243_p9), %s605_s30, 2 }
  0x11   : > { %s615_s8 = sshll.u32 (!%p243_p9), %s812_s22, 7 }
  0x12   : > { %s892_s25 = scalar_lea.hbm (!%p243_p9), %s960_s5, %s615_s8 }
  0x15   : > { %s968_s30 = smov (!%p301_p10, %s605_s30), 2  ;;  %vm347_vm0 = vcmask 130048   ;;  %v336_v4 = vlaneseq  ;;  %vm400_vm10 = vcmask 7168  }
  0x16   : > { %s606_s6 = sshll.u32 %s968_s30, 3  ;;  %s611_s30 = sshll.u32 %s812_s22, 4 }
  0x17   : > { %s318_s9 = scalar_lea.vmem %s956_s1, %s606_s6  ;;  %v851_v5 = vand.u32 127, %v336_v4  ;;  %s304_s12 = scalar_lea.vmem %s955_s0, %s606_s6  ;;  %v337_v48 = vshrl.u32 %v336_v4, 7  ;;  %v340_v49 = vstv %s611_s30 }
  0x18   : > { %v334_v0 = vld [vmem:[%s318_s9] sm:$0xff]  ;;  %v335_v1 = vld [vmem:[%s318_s9 + $0x8] sm:$0xff]  ;;  %s325_s13 = scalar_select %p324_p11, %s812_s22, 1 }
  0x19   : > { %v348_v2 = vsel %vm347_vm0, %v334_v0, -inf  ;;  %v351_v3 = vsel %vm347_vm0, %v335_v1, -inf  ;;  %v332_v30 = vld [vmem:[%s304_s12] sm:$0xff]  ;;  %v333_v37 = vld [vmem:[%s304_s12 + $0x8] sm:$0xff]  ;;  %v338_v50 = vadd.s32 8, %v337_v48  ;;  %v341_v51 = vadd.s32 %v340_v49, %v337_v48  ;;  %s877_s6 = sand.u32 1, %s749_s19  }
  0x1a   : > { %349 = vmax.xlane.f32.xlu0 %v348_v2  ;;  %s609_s14 = sshll.u32 %s325_s13, 3  ;;  %s603_s7 = sshll.u32 %s877_s6, 3  ;;  %vm431_vm11 = vcmp.eq.s32.totalorder %v337_v48, 0  ;;  %vm432_vm12 = vcmp.eq.s32.totalorder %v851_v5, 0 }
  0x1b   : > { %s327_s17 = scalar_lea.vmem %s957_s2, %s609_s14  ;;  %s331_s26 = scalar_lea.vmem %s958_s3, %s609_s14  ;;  %v342_v52 = vadd.s32 %v340_v49, %v338_v50  ;;  %vm343_vm8 = vcmp.lt.s32.totalorder %v341_v51, 20  ;;  %vm433_vm13 = vmand %vm431_vm11, %vm432_vm12 }
  0x1c   : > { %v413_v39 = vld [vmem:[%s327_s17] sm:$0xff]  ;;  %s288_s9 = scalar_lea.vmem [#allocation2], %s603_s7  ;;  %s885_s13 = scalar_lea.hbm %s959_s4, %s615_s8 }
  0x1d   : > { %v414_v40 = vld [vmem:[%s331_s26] sm:$0xff]  ;;  %vm344_vm9 = vcmp.lt.s32.totalorder %v342_v52, 20  ;;  %s459_s10 = sshll.u32 %s288_s9, 4  ;;  %s295_s14 = scalar_lea.vmem [#allocation4], %s603_s7  ;;  %s887_s10 = int_to_ptr.vmem [resolvable:$true] %s459_s10 }
  0x1e   : > { %352 = vmax.xlane.f32.xlu0 %v351_v3  ;;  %v415_v42 = vsub.f32 %v413_v39, %v414_v40  ;;  %s472_s15 = sshll.u32 %s295_s14, 4  ;;  %s441_s26 = scalar_lea.sflag [#allocation3], %s877_s6  ;;  %s894_s15 = int_to_ptr.vmem [resolvable:$true] %s472_s15 }
  0x1f   : > { %s667_s30 = scalar_lea.vmem %s887_s10, 128  ;;  %s759_s7 = smov [#allocation2]  }
  0x20   : > { %v416_v43 = vand.u32 2147483647, %v415_v42  ;;  %p668_p12 = scmp.ne.s32.totalorder %s887_s10, %s667_s30  ;;  %s671_s11 = sshll.u32 %s759_s7, 4  ;;  %s672_s11 = int_to_ptr.vmem [resolvable:$false] %s671_s11 }
  0x21   : > { %s673_s12 = scalar_lea.vmem %s672_s11, 256  ;;  %p674_p1 = scmp.lt.s32.totalorder %s887_s10, %s672_s11 }
  0x22   : > { %v418_v44 = vmul.f32 0.5, %v416_v43  ;;  %v612_v46 = vadd.f32 -0.5, %v416_v43  ;;  %vm417_vm7 = vcmp.lt.f32.partialorder %v416_v43, 1.0  ;;  %p669_p13 = pnand %p668_p12, %p829_p5  ;;  %p675_p2 = scmp.lt.s32.totalorder %s673_s12, %s667_s30 }
  0x24   : > { %v419_v45 = vmul.f32 %v418_v44, %v416_v43  ;;  %p670_p0 = pneg %p669_p13  ;;  %p676_p3 = por %p675_p2, %p674_p1 }
  0x26   : > { %v421_v47 = vsel %vm417_vm7, %v419_v45, %v612_v46  ;;  %p677_p4 = pnand %p676_p3, %p670_p0 }
  0xa3   : > { %v350_v6 = vpop.xlane.xlu0 %349 }
  0xa4   : > { %vm354_vm1 = vcmp.eq.f32.partialorder %v334_v0, %v350_v6 }
  0xa5   : > { %v356_v7 = vsel %vm354_vm1, %v851_v5, 16 }
  0xa6   : > { %v358_v8 = vsel %vm347_vm0, %v356_v7, 2147483647 }
  0xa7   : > { %v353_v9 = vpop.xlane.xlu0 %352  ;;  %v360_v10 = vshra.s32 %v358_v8, 16  ;;  %v359_v16 = vand.u32 65535, %v358_v8 }
  0xa8   : > { %vm355_vm2 = vcmp.eq.f32.partialorder %v335_v1, %v353_v9 }
  0xa9   : > { %v357_v11 = vsel %vm355_vm2, %v851_v5, 16  ;;  %v362_v12 = vcvt.s32.f32 %v360_v10  ;;  %v361_v18 = vcvt.s32.f32 %v359_v16 }
  0xaa   : > { %v373_v13 = vsel %vm347_vm0, %v357_v11, 2147483647 }
  0xab   : > { %363 = vmin.xlane.f32.xlu1 %v362_v12  ;;  %v375_v14 = vshra.s32 %v373_v13, 16  ;;  %v374_v19 = vand.u32 65535, %v373_v13 }
  0xad   : > { %v377_v15 = vcvt.s32.f32 %v375_v14  ;;  %v376_v22 = vcvt.s32.f32 %v374_v19 }
  0xaf   : > { %378 = vmin.xlane.f32.xlu1 %v377_v15 }
 0x134   : > { %v364_v17 = vpop.xlane.xlu1 %363 }
 0x135   : > { %vm365_vm3 = vcmp.eq.f32.partialorder %v362_v12, %v364_v17  ;;  %v370_v24 = vcvt.f32.s32 %v364_v17 }
 0x136   : > { %v366_v20 = vsel %vm365_vm3, %v361_v18, inf }
 0x137   : > { %367 = vmin.xlane.f32.xlu0 %v366_v20  ;;  %v371_v26 = vshll.u32 %v370_v24, 16 }
 0x138   : > { %v379_v21 = vpop.xlane.xlu1 %378 }
 0x139   : > { %vm380_vm4 = vcmp.eq.f32.partialorder %v377_v15, %v379_v21  ;;  %v385_v27 = vcvt.f32.s32 %v379_v21 }
 0x13a   : > { %v381_v23 = vsel %vm380_vm4, %v376_v22, inf }
 0x13b   : > { %382 = vmin.xlane.f32.xlu1 %v381_v23  ;;  %v386_v32 = vshll.u32 %v385_v27, 16 }
 0x1c0   : > { %v368_v25 = vpop.xlane.xlu0 %367 }
 0x1c1   : > { %v369_v28 = vcvt.f32.s32 %v368_v25 }
 0x1c3   : > { %v372_v29 = vadd.s32 %v371_v26, %v369_v28 }
 0x1c4   : > { %v383_v31 = vpop.xlane.xlu1 %382 }
 0x1c5   : > { %v384_v33 = vcvt.f32.s32 %v383_v31  ;;  %vm388_vm5 = vcmp.eq.s32.totalorder %v851_v5, %v372_v29 }
 0x1c6   : > { %v390_v34 = vsel %vm388_vm5, %v332_v30, 0.0 }
 0x1c7   : > { %v387_v35 = vadd.s32 %v386_v32, %v384_v33  ;;  %v392_v36 = vsel %vm347_vm0, %v390_v34, 0.0 }
 0x1c8   : > { %393 = vadd.xlane.f32.xlu0 %v392_v36 }
 0x1c9   : > { %vm389_vm6 = vcmp.eq.s32.totalorder %v851_v5, %v387_v35 }
 0x1ca   : > { %v391_v38 = vsel %vm389_vm6, %v333_v37, 0.0 }
 0x1cb   : > { %v395_v41 = vsel %vm347_vm0, %v391_v38, 0.0 }
 0x1cc   : > { %396 = vadd.xlane.f32.xlu1 %v395_v41 }
 0x1d0   : > { %422 = vadd.xlane.f32.xlu1 %v421_v47 }
 0x251   : > { %v394_v53 = vpop.xlane.xlu0 %393 }
 0x252   : > { %v398_v54 = vsel %vm343_vm8, %v394_v53, 0.0 }
 0x253   : > { %v401_v57 = vsel %vm400_vm10, %v398_v54, 0.0 }
 0x255   : > { %v397_v55 = vpop.xlane.xlu1 %396 }
 0x256   : > { %v399_v56 = vsel %vm344_vm9, %v397_v55, 0.0 }
 0x257   : > { %v402_v58 = vsel %vm400_vm10, %v399_v56, 0.0 }
 0x258   : > { %v403_v59 = vadd.f32 %v402_v58, %v401_v57 }
 0x259   : > { %v423_v60 = vpop.xlane.xlu1 %422 }
 0x25a   : > { %404 = vadd.xlane.f32.xlu0 %v403_v59  ;;  %v424_v61 = vrot.slane %v423_v60, 4 }
 0x25c   : > { %v425_v62 = vadd.f32 %v424_v61, %v423_v60 }
 0x25e   : > { %v426_v63 = vrot.slane %v425_v62, 2 }
 0x260   : > { %v427_v3 = vadd.f32 %v426_v63, %v425_v62 }
 0x262   : > { %v428_v7 = vrot.slane %v427_v3, 1 }
 0x264   : > { %v429_v10 = vadd.f32 %v428_v7, %v427_v3 }
 0x2e3   : > { %v405_v0 = vpop.xlane.xlu0 %404 }
 0x2e4   : > { %v406_v1 = vrot.slane %v405_v0, 4 }
 0x2e6   : > { %v407_v2 = vadd.f32 %v406_v1, %v405_v0 }
 0x2e8   : > { %v408_v4 = vrot.slane %v407_v2, 2 }
 0x2ea   : > { %v409_v6 = vadd.f32 %v408_v4, %v407_v2 }
 0x2ec   : > { %v410_v8 = vrot.slane %v409_v6, 1 }
 0x2ee   : > { %v411_v9 = vadd.f32 %v410_v8, %v409_v6 }
 0x2f0   : > { %619 = vpush %v411_v9 }
 0x2f1   : > { %621 = vpush %v429_v10 }
 0x321   : > { %s620_s16 = spop %619 }
 0x322   : > { %v434_v11 = vstv %s620_s16  ;;  %s622_s17 = spop %621 }
 0x323   : > { %v435_v5 = vsel %vm433_vm13, %v434_v11, 0.0  ;;  %v437_v12 = vstv %s622_s17 }
 0x324   : > { %436 = vst [vmem:[%s288_s9] sm:$0xff] %v435_v5  ;;  %v438_v13 = vsel %vm433_vm13, %v437_v12, 0.0 }
 0x325   : > { %439 = vst [vmem:[%s295_s14] sm:$0xff] %v438_v13 }
 0x326   : > { %680 = shalt.err (!%p677_p4)
}
 0x327   : > { %s681_s8 = scalar_lea.hbm %s885_s13, 128  ;;  %s685_s16 = scalar_lea.hbm %s959_s4, 256 }
 0x328   : > { %p682_p7 = scmp.ne.s32.totalorder %s885_s13, %s681_s8  ;;  %p686_p10 = scmp.lt.s32.totalorder %s885_s13, %s959_s4 }
 0x329   : > { %p687_p11 = scmp.lt.s32.totalorder %s685_s16, %s681_s8 }
 0x32a   : > { %p683_p8 = pnand %p682_p7, %p829_p5 }
 0x32b   : > { %p688_p12 = por %p687_p11, %p686_p10 }
 0x32c   : > { %p684_p9 = pneg %p683_p8 }
 0x32e   : > { %p689_p13 = pnand %p688_p12, %p684_p9 }
 0x330   : > { %692 = shalt.err (!%p689_p13)
}
 0x331   : > { %623 = dma.vmem_to_hbm [thread:$0]  (%p829_p5), %s887_s10, 128, %s885_s13, %s441_s26  }
 0x332   : > { %s446_s23 = scalar_lea.sflag [#allocation5], %s877_s6  ;;  %s693_s30 = scalar_lea.vmem %s894_s15, 128 }
 0x333   : > { %p694_p0 = scmp.ne.s32.totalorder %s894_s15, %s693_s30  ;;  %s760_s7 = smov [#allocation4]  }
 0x334   : > { %s697_s11 = sshll.u32 %s760_s7, 4  ;;  %s698_s11 = int_to_ptr.vmem [resolvable:$false] %s697_s11 }
 0x335   : > { %p695_p1 = pnand %p694_p0, %p829_p5  ;;  %s699_s12 = scalar_lea.vmem %s698_s11, 256 }
 0x336   : > { %p700_p3 = scmp.lt.s32.totalorder %s894_s15, %s698_s11  ;;  %p701_p4 = scmp.lt.s32.totalorder %s699_s12, %s693_s30 }
 0x337   : > { %p696_p2 = pneg %p695_p1 }
 0x338   : > { %p702_p7 = por %p701_p4, %p700_p3 }
 0x33a   : > { %p703_p8 = pnand %p702_p7, %p696_p2 }
 0x33c   : > { %706 = shalt.err (!%p703_p8)
}
 0x33d   : > { %s707_s10 = scalar_lea.hbm %s892_s25, 128  ;;  %s711_s26 = scalar_lea.hbm %s960_s5, 256 }
 0x33e   : > { %p708_p9 = scmp.ne.s32.totalorder %s892_s25, %s707_s10  ;;  %p712_p12 = scmp.lt.s32.totalorder %s892_s25, %s960_s5 }
 0x33f   : > { %p713_p13 = scmp.lt.s32.totalorder %s711_s26, %s707_s10 }
 0x340   : > { %p709_p10 = pnand %p708_p9, %p829_p5 }
 0x341   : > { %p714_p0 = por %p713_p13, %p712_p12 }
 0x342   : > { %p710_p11 = pneg %p709_p10 }
 0x344   : > { %p715_p1 = pnand %p714_p0, %p710_p11 }
 0x346   : > { %718 = shalt.err (!%p715_p1)
}
 0x347   : > { %624 = dma.vmem_to_hbm [thread:$0]  (%p829_p5), %s894_s15, 128, %s892_s25, %s446_s23  }
 0x348 PF: > { %p634_p2 = scmp.ge.s32.totalorder %s757_s21, 2  ;;  %s484_s14 = sand.u32 1, %s745_s18  }
 0x349   : > { %s485_s16 = scalar_lea.sflag [#allocation3], %s484_s14 }
 0x34a   : > { %p628_p3 = pnand %p634_p2, %p833_p6 }
 0x34c   : > { %p629_p4 = pneg %p628_p3 }
 0x34e   : > { %736 = dma.done.wait (%p629_p4), %s485_s16, 128  }
 0x34f   : > { %738 = vsyncadd (%p629_p4), %s485_s16, 4294967168  ;;  %s494_s17 = scalar_lea.sflag [#allocation5], %s484_s14 }
 0x350   : > { %740 = dma.done.wait (%p629_p4), %s494_s17, 128  }
 0x351   : > { %742 = vsyncadd (%p629_p4), %s494_s17, 4294967168  ;;  %p19_p5 = scmp.ge.s32.totalorder %s816_s24, 4   ;;  %s963_s18 = smov %s749_s19 }
 0x352   : > { %s964_s19 = smov %s753_s20  ;;  %s965_s20 = smov %s827_s27 }
 0x353   : > { %s966_s21 = smov %s816_s24  ;;  %21 = sbr.rel (!%p19_p5) target bundleno = 5 (0x5), region = 97 }
 0x358   :  { %499 = vsyncpa [#allocation3], 1 }
 0x359   :  { %501 = vsyncpa [#allocation3 + $0x1], 1 }
 0x35a   :  { %502 = vsyncpa [#allocation5], 1 }
 0x35b   :  { %504 = vsyncpa [#allocation5 + $0x1], 1 }

</bundles_post_ra>
